<compile_context>
chip_gen: v6e
topology: v6e:2x2x1
jax: 0.10.0
libtpu: 0.0.40
codegen_flags: <defaults>
</compile_context>

<pallas_src>
import functools
import math

import jax
import jax.numpy as jnp
from jax.experimental import pallas as pl
from jax.experimental.pallas import tpu as pltpu


def actor_kernel(x_ref, w1_ref, b1_ref, w2_ref, b2_ref,
                 w3_ref, b3_ref, w4_ref, b4_ref,
                 means_ref, logstd_ref, *, std):
    # x is already bf16 (cast in the wrapper).  bf16 MXU inputs, f32 accumulate.
    h1 = jnp.dot(x_ref[...], w1_ref[...],
                 preferred_element_type=jnp.float32) + b1_ref[...]
    h1 = jnp.maximum(h1, 0.0).astype(jnp.bfloat16)

    h2 = jnp.dot(h1, w2_ref[...],
                 preferred_element_type=jnp.float32) + b2_ref[...]
    h2 = jnp.maximum(h2, 0.0).astype(jnp.bfloat16)

    # Heads: fc3 -> means, fc4 -> std * tanh(.)  (tanh only on the log_std head).
    means = jnp.dot(h2, w3_ref[...],
                    preferred_element_type=jnp.float32) + b3_ref[...]
    raw = jnp.dot(h2, w4_ref[...],
                  preferred_element_type=jnp.float32) + b4_ref[...]

    means_ref[...] = means.astype(means_ref.dtype)
    logstd_ref[...] = (std * jnp.tanh(raw)).astype(logstd_ref.dtype)


def actor_forward(states, params, *, std=1.0, block_b=2048, small_batch=64):
    """Actor forward. states: (B, S) -> (means (B, A), std*tanh(log_std) (B, A))."""
    w1, b1, w2, b2, w3, b3, w4, b4 = params
    B, S = states.shape
    A = w3.shape[1]

    # bf16 MXU inputs -> 2x matmul throughput, half the weight + input bytes.
    xb = states.astype(jnp.bfloat16)
    w1b = w1.astype(jnp.bfloat16)
    w2b = w2.astype(jnp.bfloat16)
    w3b = w3.astype(jnp.bfloat16)
    w4b = w4.astype(jnp.bfloat16)

    # Batch tiling.
    if B <= small_batch:
        # Small-batch fast path: single un-tiled block, no padding.
        tb = B
        pad = 0
    else:
        # Large tiles to amortize per-step overhead; tb multiple of 8, sized to
        # balance padding across the (few) grid steps.
        nblk = pl.cdiv(B, block_b)
        tb = ((pl.cdiv(B, nblk) + 7) // 8) * 8
        pad = tb * nblk - B

    if pad:
        xb = jnp.pad(xb, ((0, pad), (0, 0)))
    bp = B + pad
    grid = (bp // tb,)

    row_spec = lambda last: pl.BlockSpec((tb, last), lambda i: (i, 0))
    res_spec = lambda a: pl.BlockSpec(a.shape, lambda i: (0,) * a.ndim)

    kernel = functools.partial(actor_kernel, std=float(std))

    means, log_std_scaled = pl.pallas_call(
        kernel,
        out_shape=(jax.ShapeDtypeStruct((bp, A), jnp.float32),
                   jax.ShapeDtypeStruct((bp, A), jnp.float32)),
        grid=grid,
        in_specs=[row_spec(S),
                  res_spec(w1b), res_spec(b1),
                  res_spec(w2b), res_spec(b2),
                  res_spec(w3b), res_spec(b3),
                  res_spec(w4b), res_spec(b4)],
        out_specs=[row_spec(A), row_spec(A)],
        compiler_params=pltpu.CompilerParams(
            dimension_semantics=(pltpu.PARALLEL,)),
    )(xb, w1b, b1, w2b, b2, w3b, b3, w4b, b4)

    if pad:
        means = means[:B]
        log_std_scaled = log_std_scaled[:B]
    return means, log_std_scaled


def init_actor_params(key, state_size, action_size, hidden=(256, 256)):
    """Deterministic init matching Actor.reset_parameters.

    Note: hidden_unit() in the reference uses weight.size()[0], which for
    nn.Linear's (out, in) weight is the OUT feature count, so the fc1/fc2
    bound is 1/sqrt(out_features).  fc3/fc4 use uniform(-3e-3, 3e-3).
    """
    ks = jax.random.split(key, 8)

    def uni(k, shape, bound):
        return jax.random.uniform(k, shape, jnp.float32, -bound, bound)

    b1_bound = 1.0 / math.sqrt(hidden[0])
    b2_bound = 1.0 / math.sqrt(hidden[1])
    # stored as (in, out) == W^T of PyTorch's (out, in)
    w1 = uni(ks[0], (state_size, hidden[0]), b1_bound)
    b1 = uni(ks[1], (1, hidden[0]), b1_bound)
    w2 = uni(ks[2], (hidden[0], hidden[1]), b2_bound)
    b2 = uni(ks[3], (1, hidden[1]), b2_bound)
    w3 = uni(ks[4], (hidden[1], action_size), 3e-3)
    b3 = uni(ks[5], (1, action_size), 3e-3)
    w4 = uni(ks[6], (hidden[1], action_size), 3e-3)
    b4 = uni(ks[7], (1, action_size), 3e-3)
    return (w1, b1, w2, b2, w3, b3, w4, b4)


def _reference(states, params, std):
    """Pure-JAX reference mirroring the kernel's bf16-input / f32-acc numerics."""
    w1, b1, w2, b2, w3, b3, w4, b4 = params
    bf = lambda a: a.astype(jnp.bfloat16)
    h1 = jnp.maximum(
        jnp.dot(bf(states), bf(w1), preferred_element_type=jnp.float32) + b1, 0.0)
    h2 = jnp.maximum(
        jnp.dot(bf(h1), bf(w2), preferred_element_type=jnp.float32) + b2, 0.0)
    means = jnp.dot(bf(h2), bf(w3), preferred_element_type=jnp.float32) + b3
    log_std = std * jnp.tanh(
        jnp.dot(bf(h2), bf(w4), preferred_element_type=jnp.float32) + b4)
    return means, log_std


if __name__ == "__main__":
    # Small shapes consistent with the module's forward.
    batch = 2
    state_size = 8
    action_size = 4
    hidden = (32, 32)
    std = 1.0

    key = jax.random.PRNGKey(0)
    kp, ks, ks2 = jax.random.split(key, 3)

    params = init_actor_params(kp, state_size, action_size, hidden)

    # --- Case 1: small-batch fast path (single un-tiled block) ---
    states = jax.random.normal(ks, (batch, state_size), jnp.float32)
    means, log_std = actor_forward(states, params, std=std)
    means = jax.block_until_ready(means)
    log_std = jax.block_until_ready(log_std)

    means_ref, logstd_ref = _reference(states, params, std)
    assert means.shape == (batch, action_size), means.shape
    assert log_std.shape == (batch, action_size), log_std.shape
    assert jnp.allclose(means, means_ref, atol=2e-3, rtol=2e-3)
    assert jnp.allclose(log_std, logstd_ref, atol=2e-3, rtol=2e-3)

    # --- Case 2: tiled path with padding (forced small tiles to exercise it) ---
    batch2 = 200
    states2 = jax.random.normal(ks2, (batch2, state_size), jnp.float32)
    means2, log_std2 = actor_forward(states2, params, std=std,
                                     block_b=64, small_batch=16)
    means2 = jax.block_until_ready(means2)
    log_std2 = jax.block_until_ready(log_std2)

    means2_ref, logstd2_ref = _reference(states2, params, std)
    assert means2.shape == (batch2, action_size), means2.shape
    assert log_std2.shape == (batch2, action_size), log_std2.shape
    assert jnp.allclose(means2, means2_ref, atol=2e-3, rtol=2e-3)
    assert jnp.allclose(log_std2, logstd2_ref, atol=2e-3, rtol=2e-3)

    print("KERNEL_OK")
</pallas_src>

<mosaic_0001>
module attributes {stable_mosaic.version = 11 : i64} {
  func.func @actor_kernel(%arg0: i32, %arg1: memref<2x8xbf16, #tpu.memory_space<vmem>>, %arg2: memref<8x32xbf16, #tpu.memory_space<vmem>>, %arg3: memref<1x32xf32, #tpu.memory_space<vmem>>, %arg4: memref<32x32xbf16, #tpu.memory_space<vmem>>, %arg5: memref<1x32xf32, #tpu.memory_space<vmem>>, %arg6: memref<32x4xbf16, #tpu.memory_space<vmem>>, %arg7: memref<1x4xf32, #tpu.memory_space<vmem>>, %arg8: memref<32x4xbf16, #tpu.memory_space<vmem>>, %arg9: memref<1x4xf32, #tpu.memory_space<vmem>>, %arg10: memref<2x4xf32, #tpu.memory_space<vmem>>, %arg11: memref<2x4xf32, #tpu.memory_space<vmem>>) attributes {dimension_semantics = [#tpu.dimension_semantics<parallel>], iteration_bounds = array<i64: 1>, scalar_prefetch = 0 : i64, scratch_operands = 0 : i64, tpu.core_type = #tpu.core_type<tc>, window_params = [{transform_indices = @transform_0, window_bounds = array<i64: 2, 8>}, {pipeline_mode = #tpu.pipeline_mode<synchronous>, transform_indices = @transform_1, window_bounds = array<i64: 8, 32>}, {pipeline_mode = #tpu.pipeline_mode<synchronous>, transform_indices = @transform_2, window_bounds = array<i64: 1, 32>}, {pipeline_mode = #tpu.pipeline_mode<synchronous>, transform_indices = @transform_3, window_bounds = array<i64: 32, 32>}, {pipeline_mode = #tpu.pipeline_mode<synchronous>, transform_indices = @transform_4, window_bounds = array<i64: 1, 32>}, {pipeline_mode = #tpu.pipeline_mode<synchronous>, transform_indices = @transform_5, window_bounds = array<i64: 32, 4>}, {pipeline_mode = #tpu.pipeline_mode<synchronous>, transform_indices = @transform_6, window_bounds = array<i64: 1, 4>}, {pipeline_mode = #tpu.pipeline_mode<synchronous>, transform_indices = @transform_7, window_bounds = array<i64: 32, 4>}, {pipeline_mode = #tpu.pipeline_mode<synchronous>, transform_indices = @transform_8, window_bounds = array<i64: 1, 4>}, {transform_indices = @transform_9, window_bounds = array<i64: 2, 4>}, {transform_indices = @transform_10, window_bounds = array<i64: 2, 4>}]} {
    %c0 = arith.constant 0 : index
    %c0_0 = arith.constant 0 : index
    %0 = vector.load %arg1[%c0, %c0_0] : memref<2x8xbf16, #tpu.memory_space<vmem>>, vector<2x8xbf16>
    %c0_1 = arith.constant 0 : index
    %c0_2 = arith.constant 0 : index
    %1 = vector.load %arg2[%c0_1, %c0_2] : memref<8x32xbf16, #tpu.memory_space<vmem>>, vector<8x32xbf16>
    %cst = arith.constant dense<0.000000e+00> : vector<2x32xf32>
    %2 = tpu.matmul %0, %1, %cst {dimension_numbers = #tpu.dot_dimension_numbers<[1], [0], [0], [1], [0, 0, 1, 1], [], []>} : vector<2x8xbf16>, vector<8x32xbf16>, vector<2x32xf32> -> vector<2x32xf32>
    %c0_3 = arith.constant 0 : index
    %c0_4 = arith.constant 0 : index
    %3 = vector.load %arg3[%c0_3, %c0_4] : memref<1x32xf32, #tpu.memory_space<vmem>>, vector<1x32xf32>
    %4 = vector.broadcast %3 : vector<1x32xf32> to vector<2x32xf32>
    %5 = arith.addf %2, %4 : vector<2x32xf32>
    %cst_5 = arith.constant 0.000000e+00 : f32
    %6 = vector.broadcast %cst_5 : f32 to vector<2x32xf32>
    %7 = arith.maximumf %5, %6 : vector<2x32xf32>
    %8 = arith.truncf %7 : vector<2x32xf32> to vector<2x32xbf16>
    %c0_6 = arith.constant 0 : index
    %c0_7 = arith.constant 0 : index
    %9 = vector.load %arg4[%c0_6, %c0_7] : memref<32x32xbf16, #tpu.memory_space<vmem>>, vector<32x32xbf16>
    %cst_8 = arith.constant dense<0.000000e+00> : vector<2x32xf32>
    %10 = tpu.matmul %8, %9, %cst_8 {dimension_numbers = #tpu.dot_dimension_numbers<[1], [0], [0], [1], [0, 0, 1, 1], [], []>} : vector<2x32xbf16>, vector<32x32xbf16>, vector<2x32xf32> -> vector<2x32xf32>
    %c0_9 = arith.constant 0 : index
    %c0_10 = arith.constant 0 : index
    %11 = vector.load %arg5[%c0_9, %c0_10] : memref<1x32xf32, #tpu.memory_space<vmem>>, vector<1x32xf32>
    %12 = vector.broadcast %11 : vector<1x32xf32> to vector<2x32xf32>
    %13 = arith.addf %10, %12 : vector<2x32xf32>
    %cst_11 = arith.constant 0.000000e+00 : f32
    %14 = vector.broadcast %cst_11 : f32 to vector<2x32xf32>
    %15 = arith.maximumf %13, %14 : vector<2x32xf32>
    %16 = arith.truncf %15 : vector<2x32xf32> to vector<2x32xbf16>
    %c0_12 = arith.constant 0 : index
    %c0_13 = arith.constant 0 : index
    %17 = vector.load %arg6[%c0_12, %c0_13] : memref<32x4xbf16, #tpu.memory_space<vmem>>, vector<32x4xbf16>
    %cst_14 = arith.constant dense<0.000000e+00> : vector<2x4xf32>
    %18 = tpu.matmul %16, %17, %cst_14 {dimension_numbers = #tpu.dot_dimension_numbers<[1], [0], [0], [1], [0, 0, 1, 1], [], []>} : vector<2x32xbf16>, vector<32x4xbf16>, vector<2x4xf32> -> vector<2x4xf32>
    %c0_15 = arith.constant 0 : index
    %c0_16 = arith.constant 0 : index
    %19 = vector.load %arg7[%c0_15, %c0_16] : memref<1x4xf32, #tpu.memory_space<vmem>>, vector<1x4xf32>
    %20 = vector.broadcast %19 : vector<1x4xf32> to vector<2x4xf32>
    %21 = arith.addf %18, %20 : vector<2x4xf32>
    %c0_17 = arith.constant 0 : index
    %c0_18 = arith.constant 0 : index
    %22 = vector.load %arg8[%c0_17, %c0_18] : memref<32x4xbf16, #tpu.memory_space<vmem>>, vector<32x4xbf16>
    %cst_19 = arith.constant dense<0.000000e+00> : vector<2x4xf32>
    %23 = tpu.matmul %16, %22, %cst_19 {dimension_numbers = #tpu.dot_dimension_numbers<[1], [0], [0], [1], [0, 0, 1, 1], [], []>} : vector<2x32xbf16>, vector<32x4xbf16>, vector<2x4xf32> -> vector<2x4xf32>
    %c0_20 = arith.constant 0 : index
    %c0_21 = arith.constant 0 : index
    %24 = vector.load %arg9[%c0_20, %c0_21] : memref<1x4xf32, #tpu.memory_space<vmem>>, vector<1x4xf32>
    %25 = vector.broadcast %24 : vector<1x4xf32> to vector<2x4xf32>
    %26 = arith.addf %23, %25 : vector<2x4xf32>
    %c0_22 = arith.constant 0 : index
    %c0_23 = arith.constant 0 : index
    %27 = vector.load %arg10[%c0_22, %c0_23] : memref<2x4xf32, #tpu.memory_space<vmem>>, vector<2x4xf32>
    tpu.vector_store %arg10[%c0_22, %c0_23], %21 {strides = array<i32>} : memref<2x4xf32, #tpu.memory_space<vmem>>, vector<2x4xf32>,
    %28 = math.tanh %26 : vector<2x4xf32>
    %cst_24 = arith.constant 1.000000e+00 : f32
    %29 = vector.broadcast %cst_24 : f32 to vector<2x4xf32>
    %30 = arith.mulf %29, %28 : vector<2x4xf32>
    %c0_25 = arith.constant 0 : index
    %c0_26 = arith.constant 0 : index
    %31 = vector.load %arg11[%c0_25, %c0_26] : memref<2x4xf32, #tpu.memory_space<vmem>>, vector<2x4xf32>
    tpu.vector_store %arg11[%c0_25, %c0_26], %30 {strides = array<i32>} : memref<2x4xf32, #tpu.memory_space<vmem>>, vector<2x4xf32>,
    return
  }
  func.func @transform_0(%arg0: i32) -> (i32, i32) {
    %c0_i32 = arith.constant 0 : i32
    %c0_i32_0 = arith.constant 0 : i32
    return %arg0, %c0_i32 : i32, i32
  }
  func.func @transform_1(%arg0: i32) -> (i32, i32) {
    %c0_i32 = arith.constant 0 : i32
    %c0_i32_0 = arith.constant 0 : i32
    %c0_i32_1 = arith.constant 0 : i32
    return %c0_i32, %c0_i32_0 : i32, i32
  }
  func.func @transform_2(%arg0: i32) -> (i32, i32) {
    %c0_i32 = arith.constant 0 : i32
    %c0_i32_0 = arith.constant 0 : i32
    %c0_i32_1 = arith.constant 0 : i32
    return %c0_i32, %c0_i32_0 : i32, i32
  }
  func.func @transform_3(%arg0: i32) -> (i32, i32) {
    %c0_i32 = arith.constant 0 : i32
    %c0_i32_0 = arith.constant 0 : i32
    %c0_i32_1 = arith.constant 0 : i32
    return %c0_i32, %c0_i32_0 : i32, i32
  }
  func.func @transform_4(%arg0: i32) -> (i32, i32) {
    %c0_i32 = arith.constant 0 : i32
    %c0_i32_0 = arith.constant 0 : i32
    %c0_i32_1 = arith.constant 0 : i32
    return %c0_i32, %c0_i32_0 : i32, i32
  }
  func.func @transform_5(%arg0: i32) -> (i32, i32) {
    %c0_i32 = arith.constant 0 : i32
    %c0_i32_0 = arith.constant 0 : i32
    %c0_i32_1 = arith.constant 0 : i32
    return %c0_i32, %c0_i32_0 : i32, i32
  }
  func.func @transform_6(%arg0: i32) -> (i32, i32) {
    %c0_i32 = arith.constant 0 : i32
    %c0_i32_0 = arith.constant 0 : i32
    %c0_i32_1 = arith.constant 0 : i32
    return %c0_i32, %c0_i32_0 : i32, i32
  }
  func.func @transform_7(%arg0: i32) -> (i32, i32) {
    %c0_i32 = arith.constant 0 : i32
    %c0_i32_0 = arith.constant 0 : i32
    %c0_i32_1 = arith.constant 0 : i32
    return %c0_i32, %c0_i32_0 : i32, i32
  }
  func.func @transform_8(%arg0: i32) -> (i32, i32) {
    %c0_i32 = arith.constant 0 : i32
    %c0_i32_0 = arith.constant 0 : i32
    %c0_i32_1 = arith.constant 0 : i32
    return %c0_i32, %c0_i32_0 : i32, i32
  }
  func.func @transform_9(%arg0: i32) -> (i32, i32) {
    %c0_i32 = arith.constant 0 : i32
    %c0_i32_0 = arith.constant 0 : i32
    return %arg0, %c0_i32 : i32, i32
  }
  func.func @transform_10(%arg0: i32) -> (i32, i32) {
    %c0_i32 = arith.constant 0 : i32
    %c0_i32_0 = arith.constant 0 : i32
    return %arg0, %c0_i32 : i32, i32
  }
}

</mosaic_0001>

<bundles_post_ra>
// kernel: tpu_custom_call.1
= control target key start
LH: loop header
LB: loop body
LE: loop exit
PB: predicated region body
PF: predicated region fallthrough
CT: control target
= control target key end

     0   :  { %16 = vsyncpa [#allocation3], 0  ;;  %vm50_vm0 = vcmask 1043456   ;;  %v437_v1 = vmov 0.0   ;;  %vm438_vm1 = vmmov 0   ;;  %vm46_vm2 = vcmask 64512   ;;  %s547_s0 = inlined_call_operand.vmem [shape: bf16[2,8], index: 0, kind: input, shape index: {}]   ;;  %s548_s1 = inlined_call_operand.vmem [shape: bf16[8,32], index: 1, kind: input, shape index: {}]   ;;  %s549_s2 = inlined_call_operand.vmem [shape: f32[1,32], index: 2, kind: input, shape index: {}]   ;;  %s550_s3 = inlined_call_operand.vmem [shape: bf16[32,32], index: 3, kind: input, shape index: {}]   ;;  %s551_s4 = inlined_call_operand.vmem [shape: f32[1,32], index: 4, kind: input, shape index: {}]   ;;  %s552_s5 = inlined_call_operand.vmem [shape: bf16[32,4], index: 5, kind: input, shape index: {}]   ;;  %s553_s6 = inlined_call_operand.vmem [shape: f32[1,4], index: 6, kind: input, shape index: {}]   ;;  %s554_s7 = inlined_call_operand.vmem [shape: bf16[32,4], index: 7, kind: input, shape index: {}]   ;;  %s555_s8 = inlined_call_operand.vmem [shape: f32[1,4], index: 8, kind: input, shape index: {}]   ;;  %s556_s9 = inlined_call_operand.hbm [shape: f32[2,4], index: 9, kind: output, shape index: {0}]   ;;  %s557_s10 = inlined_call_operand.hbm [shape: f32[2,4], index: 10, kind: output, shape index: {1}]  }
   0x1   :  { %v38_v0 = vld [vmem:[%s548_s1] sm:$0xf]  ;;  %351 = vmatprep.subr.bf16.mxu0 %v437_v1  ;;  %353 = vmatprep.mubr.msk.bf16.mxu0 %vm438_vm1, %v437_v1 }
   0x2   :  { %v52_v2 = vsel %vm50_vm0, %v38_v0, 0  ;;  %v37_v3 = vld [vmem:[%s547_s0] sm:$0x1]  ;;  %357 = vmatprep.subr.bf16.mxu1 %v437_v1  ;;  %361 = vmatprep.mubr.msk.bf16.mxu1 %vm438_vm1, %v437_v1 }
   0x3   :  { %352 = vmatpush3.bf16.msra.mxu0 %v52_v2 }
   0x4   :  { %365 = vmatprep.subr.bf16.mxu0 %v437_v1 }
   0x6   :  { %354 = vmatmul.mubr.msk.bf16.vlgmr.msra.gmra.mxu0 %vm46_vm2, %v37_v3 }
   0x7   :  { %369 = vmatprep.mubr.msk.bf16.mxu0 %vm438_vm1, %v437_v1 }
   0x8   :  { %17 = vsyncpa [#allocation5], 0  ;;  %v385_v4 = vld [vmem:[%s550_s3 + $0x8] sm:$0xff]   ;;  %v386_v5 = vld [vmem:[%s550_s3] sm:$0xff]   ;;  %vm119_vm3 = vcmask 261120   ;;  %vm294_vm4 = vcmask 25600  }
   0x9   :  { %358 = vmatpush3.bf16.msra.mxu1 %v385_v4  ;;  %v326_v6 = vld [vmem:[%s549_s2] ss:$0 sm:$0xff]  ;;  %v387_v12 = vld [vmem:[%s554_s7 + $0x8] sm:$0xff]  }
   0xa   :  { %359 = vmatprep.subr.bf16.mxu1 %v437_v1  ;;  %v388_v15 = vld [vmem:[%s552_s5 + $0x8] sm:$0xff]   ;;  %v389_v16 = vld [vmem:[%s554_s7] sm:$0xff]  }
   0xb   :  { %366 = vmatpush3.bf16.msra.mxu0 %v388_v15  ;;  %v390_v17 = vld [vmem:[%s552_s5] sm:$0xff]  }
   0xc   :  { %367 = vmatprep.subr.bf16.mxu0 %v437_v1  ;;  %v328_v18 = vld [vmem:[%s551_s4] ss:$0 sm:$0xff]  ;;  %s439_s4 = smov [#allocation2]  }
   0xd   :  { %360 = vmatpush3.bf16.msra.mxu1 %v386_v5  ;;  %v332_v26 = vld [vmem:[%s553_s6] ss:$0 sm:$0xff]  ;;  %s304_s11 = sshll.u32 %s439_s4, 4  ;;  %s305_s11 = int_to_ptr.vmem [resolvable:$true] %s304_s11 }
   0xe   :  { %373 = vmatprep.subr.bf16.mxu1 %v437_v1  ;;  %v336_v27 = vld [vmem:[%s555_s8] ss:$0 sm:$0xff]  ;;  %s393_s6 = scalar_lea.vmem %s305_s11, 32  ;;  %p398_p1 = scmp.lt.s32.totalorder %s305_s11, %s305_s11 }
   0xf   :  { %368 = vmatpush3.bf16.msra.mxu0 %v390_v17  ;;  %p394_p0 = scmp.ne.s32.totalorder %s305_s11, %s393_s6  ;;  %p399_p2 = scmp.lt.s32.totalorder %s393_s6, %s393_s6 }
  0x11   :  { %p400_p3 = por %p399_p2, %p398_p1 }
  0x13   :  { %p401_p4 = pnand %p400_p3, %p394_p0 }
  0xc6   :  { %v88_v7 = vpop.f32.mrf.mxu0 }
  0xc7   :  { %v89_v8 = vadd.f32 %v326_v6, %v88_v7 }
  0xc8   :  { %v355_v9 = vpop.f32.mrf.mxu0 }
  0xc9   :  { %v94_v10 = vmax.f32 %v89_v8, 0.0 }
  0xca   :  { %v91_v11 = vpop.f32.mrf.mxu0 }
  0xcb   :  { %v95_v13 = vpack.c.bf16 %v94_v10, %v94_v10 }
  0xcc   :  { %v356_v14 = vpop.f32.mrf.mxu0 }
  0xcd   :  { %362 = vmatmul.mubr.msk.bf16.vlgmr.msra.gmra.mxu1 %vm119_vm3, %v95_v13 }
  0xce   :  { %374 = vmatpush3.bf16.msra.mxu1 %v387_v12  ;;  %377 = vmatprep.mubr.msk.bf16.mxu1 %vm438_vm1, %v437_v1 }
  0xcf   :  { %375 = vmatprep.subr.bf16.mxu1 %v437_v1 }
  0xd2   :  { %376 = vmatpush3.bf16.msra.mxu1 %v389_v16 }
 0x18d   :  { %v157_v19 = vpop.f32.mrf.mxu1 }
 0x18e   :  { %v158_v20 = vadd.f32 %v328_v18, %v157_v19 }
 0x18f   :  { %v363_v21 = vpop.f32.mrf.mxu1 }
 0x190   :  { %v163_v22 = vmax.f32 %v158_v20, 0.0 }
 0x191   :  { %v160_v23 = vpop.f32.mrf.mxu1 }
 0x192   :  { %v164_v24 = vpack.c.bf16 %v163_v22, %v163_v22 }
 0x193   :  { %v364_v25 = vpop.f32.mrf.mxu1 }
 0x194   :  { %370 = vmatmul.mubr.msk.bf16.vlgmr.msra.gmra.mxu0 %vm119_vm3, %v164_v24  ;;  %378 = vmatmul.mubr.msk.bf16.vlgmr.msra.gmra.mxu1 %vm119_vm3, %v164_v24 }
 0x254   :  { %v225_v28 = vpop.f32.mrf.mxu0  ;;  %v288_v29 = vpop.f32.mrf.mxu1 }
 0x255   :  { %v226_v30 = vadd.f32 %v332_v26, %v225_v28  ;;  %v289_v31 = vadd.f32 %v336_v27, %v288_v29 }
 0x256   :  { %v371_v32 = vpop.f32.mrf.mxu0  ;;  %v379_v33 = vpop.f32.mrf.mxu1 }
 0x257   :  { %391 = vtanh.f32 %v289_v31  ;;  %295 = vst.msk [vmem:[#allocation2] sm:$0x3] %vm294_vm4, %v226_v30 }
 0x258   :  { %v228_v34 = vpop.f32.mrf.mxu0  ;;  %v291_v35 = vpop.f32.mrf.mxu1 }
 0x259   :  { %404 = shalt.err (!%p401_p4)
}
 0x25a   :  { %307 = dma.vmem_to_hbm [thread:$0]  %s305_s11, 32, %s556_s9, [#allocation3]   ;;  %v372_v36 = vpop.f32.mrf.mxu0  ;;  %v380_v37 = vpop.f32.mrf.mxu1 }
 0x25b   :  { %s440_s13 = smov [#allocation4]  }
 0x25c   :  { %s314_s14 = sshll.u32 %s440_s13, 4  ;;  %s315_s14 = int_to_ptr.vmem [resolvable:$true] %s314_s14 }
 0x25d   :  { %s413_s15 = scalar_lea.vmem %s315_s14, 32  ;;  %p418_p6 = scmp.lt.s32.totalorder %s315_s14, %s315_s14 }
 0x25e   :  { %p414_p5 = scmp.ne.s32.totalorder %s315_s14, %s413_s15  ;;  %p419_p7 = scmp.lt.s32.totalorder %s413_s15, %s413_s15 }
 0x260   :  { %p420_p8 = por %p419_p7, %p418_p6 }
 0x262   :  { %p421_p9 = pnand %p420_p8, %p414_p5 }
 0x264   :  { %v392_v38 = vpop.eup %391 }
 0x265   :  { %297 = vst.msk [vmem:[#allocation4] sm:$0x3] %vm294_vm4, %v392_v38 }
 0x266   :  { %424 = shalt.err (!%p421_p9)
}
 0x267   :  { %317 = dma.vmem_to_hbm [thread:$0]  %s315_s14, 32, %s557_s10, [#allocation5]  }
 0x268   :  { %433 = dma.done.wait [#allocation3], 32  }
 0x269   :  { %434 = vsyncadd [#allocation3], 4294967264 }
 0x26a   :  { %435 = dma.done.wait [#allocation5], 32  }
 0x26b   :  { %436 = vsyncadd [#allocation5], 4294967264 }
 0x26c   :  { %324 = vsyncpa [#allocation3], 1 }
 0x26d   :  { %325 = vsyncpa [#allocation5], 1 }

</bundles_post_ra>
